<compile_context>
chip_gen: v7x
topology: tpu7x:2x2x1
jax: 0.10.0
libtpu: 0.0.40
codegen_flags: <defaults>
</compile_context>

<pallas_src>
import jax
import jax.numpy as jnp
from jax.experimental import pallas as pl
from jax.experimental.pallas import tpu as pltpu


def _conv1x1_kernel(w_ref, x_ref, o_ref):
    # w_ref: (C_out, C_in) resident weight (constant block index).
    # x_ref: (C_in, TS)    spatial tile of one image (lane axis = spatial).
    # o_ref: (C_out, TS)   lane-dense output tile.
    o_ref[...] = jnp.dot(
        w_ref[...], x_ref[...], preferred_element_type=jnp.float32
    ).astype(o_ref.dtype)


def fpn_bottleneck_block_bn_forward(x_nchw, weight_oi11, compute_dtype=jnp.bfloat16):
    """x_nchw: (N, C_in, H, W); weight_oi11: (C_out, C_in, 1, 1) PyTorch layout."""
    n, c_in, h, w = x_nchw.shape
    c_out = weight_oi11.shape[0]
    hw = h * w
    out_dtype = x_nchw.dtype
    if compute_dtype is None:
        compute_dtype = x_nchw.dtype

    # ---- layout plumbing: pure reshapes (no transposes) ---------------------
    # In a real pipeline feed bf16 activations directly so this cast is a no-op.
    x3 = x_nchw.reshape(n, c_in, hw).astype(compute_dtype)        # (N, C_in, HW)
    w_mat = weight_oi11.reshape(c_out, c_in).astype(compute_dtype)

    # ---- small FPN levels (hw < 128): pad spatial up to one full lane -------
    hw_work = hw
    if hw < 128:
        x3 = jnp.pad(x3, ((0, 0), (0, 0), (0, 128 - hw)))
        hw_work = 128

    x_bytes = jnp.dtype(compute_dtype).itemsize
    o_bytes = jnp.dtype(out_dtype).itemsize

    # ---- generation-aware VMEM budgeting -------------------------------------
    try:
        vmem_cap = int(getattr(pltpu.get_tpu_info(), "vmem_capacity_bytes",
                               64 * 1024 * 1024))
    except Exception:  # interpret mode / AOT on CPU: stay conservative
        vmem_cap = 64 * 1024 * 1024
    if vmem_cap >= 100 * 1024 * 1024:        # v5e / v6e: 128 MiB physical VMEM
        vmem_budget = 48 * 1024 * 1024
        vmem_clamp = 96 * 1024 * 1024
    else:                                    # v7x: 64 MiB physical per TC
        vmem_budget = 16 * 1024 * 1024
        vmem_clamp = 48 * 1024 * 1024

    # ---- spatial tile sized against the TRUE footprint (weight included) ----
    # Weight counted double-buffered (conservative: default BlockSpec
    # pipelining keeps two copies even with a constant index map).
    # TODO(synk): switch the weight BlockSpec to pipeline_mode=pl.Buffered(1)
    # (and sweep Buffered(3) on x) once single-buffering is confirmed safe.
    w_foot = 2 * c_out * c_in * x_bytes
    per_lane = 2 * (c_in * x_bytes + c_out * o_bytes)   # dbl-buffered x + out
    avail = max(vmem_budget - w_foot - (2 * 1024 * 1024), per_lane * 128)
    max_ts = min(8192, max(128, avail // per_lane))

    if hw_work <= max_ts:
        ts = hw_work                               # full extent (always legal)
    else:
        ts = (max_ts // 128) * 128                 # lane-aligned bounded tile

    # Spatial axis FIRST: v7x megacore shards the leading parallel axis, so
    # batch=1 inference still uses both TensorCores.  No effect on v5e/v6e.
    grid = (pl.cdiv(hw_work, ts), n)

    vmem_needed = per_lane * ts + w_foot
    vmem_limit = int(min(max(vmem_needed + (4 << 20), 16 << 20), vmem_clamp))

    out3 = pl.pallas_call(
        _conv1x1_kernel,
        out_shape=jax.ShapeDtypeStruct((n, c_out, hw_work), out_dtype),
        grid_spec=pltpu.PrefetchScalarGridSpec(
            num_scalar_prefetch=0,
            grid=grid,
            in_specs=[
                # Weight: full array, constant block index (stays resident).
                pl.BlockSpec((c_out, c_in), lambda s, b: (0, 0)),
                # Input: one image's spatial tile; batch dim squeezed -> 2-D ref.
                pl.BlockSpec((None, c_in, ts), lambda s, b: (b, 0, s)),
            ],
            out_specs=pl.BlockSpec((None, c_out, ts), lambda s, b: (b, 0, s)),
        ),
        compiler_params=pltpu.CompilerParams(
            dimension_semantics=("parallel", "parallel"),
            vmem_limit_bytes=vmem_limit,
        ),
        cost_estimate=pl.CostEstimate(
            flops=2 * n * hw_work * c_in * c_out,
            transcendentals=0,
            bytes_accessed=(n * c_in * hw_work * x_bytes
                            + c_out * c_in * x_bytes
                            + n * c_out * hw_work * o_bytes),
        ),
    )(w_mat, x3)

    if hw_work != hw:
        out3 = out3[:, :, :hw]
    return out3.reshape(n, c_out, h, w)            # already NCHW


if __name__ == "__main__":
    key = jax.random.PRNGKey(0)
    k_x, k_w = jax.random.split(key)

    N, C_IN, C_OUT, H, W = 2, 4, 8, 16, 16

    x = jax.random.normal(k_x, (N, C_IN, H, W), dtype=jnp.float32)
    # Deterministic synthetic conv weight, PyTorch layout (C_out, C_in, 1, 1).
    weight = jax.random.normal(k_w, (C_OUT, C_IN, 1, 1), dtype=jnp.float32) * 0.1

    out = fpn_bottleneck_block_bn_forward(x, weight)
    jax.block_until_ready(out)

    assert out.shape == (N, C_OUT, H, W)
    assert out.dtype == x.dtype

    # Reference: same bf16-rounded operands, exact f32 accumulation.
    x_r = x.astype(jnp.bfloat16).astype(jnp.float32)
    w_r = weight.reshape(C_OUT, C_IN).astype(jnp.bfloat16).astype(jnp.float32)
    ref = jnp.einsum("nchw,oc->nohw", x_r, w_r,
                     precision=jax.lax.Precision.HIGHEST)
    assert jnp.allclose(out, ref, atol=1e-3, rtol=1e-3)

    # TODO(synk): self.bn is constructed but never applied in the reference
    # forward(); if upstream ever applies it, fold gamma/beta/mean/var into
    # the weight plus a per-channel bias inside this same kernel.

    print("KERNEL_OK")
</pallas_src>

<mosaic_0001>
module attributes {stable_mosaic.version = 11 : i64} {
  func.func @_conv1x1_kernel(%arg0: i32, %arg1: i32, %arg2: memref<8x4xbf16, #tpu.memory_space<vmem>>, %arg3: memref<1x4x256xbf16, #tpu.memory_space<vmem>>, %arg4: memref<1x8x256xf32, #tpu.memory_space<vmem>>) attributes {dimension_semantics = [#tpu.dimension_semantics<parallel>, #tpu.dimension_semantics<parallel>], iteration_bounds = array<i64: 1, 2>, scalar_prefetch = 0 : i64, scratch_operands = 0 : i64, tpu.core_type = #tpu.core_type<tc>, window_params = [{pipeline_mode = #tpu.pipeline_mode<synchronous>, transform_indices = @transform_0, window_bounds = array<i64: 8, 4>}, {transform_indices = @transform_1, window_bounds = array<i64: 1, 4, 256>}, {transform_indices = @transform_2, window_bounds = array<i64: 1, 8, 256>}]} {
    %c0 = arith.constant 0 : index
    %c0_0 = arith.constant 0 : index
    %0 = vector.load %arg2[%c0, %c0_0] : memref<8x4xbf16, #tpu.memory_space<vmem>>, vector<8x4xbf16>
    %c0_1 = arith.constant 0 : index
    %c0_2 = arith.constant 0 : index
    %c0_3 = arith.constant 0 : index
    %1 = vector.load %arg3[%c0_1, %c0_2, %c0_3] : memref<1x4x256xbf16, #tpu.memory_space<vmem>>, vector<1x4x256xbf16>
    %2 = vector.shape_cast %1 : vector<1x4x256xbf16> to vector<4x256xbf16>
    %cst = arith.constant dense<0.000000e+00> : vector<8x256xf32>
    %3 = tpu.matmul %0, %2, %cst {dimension_numbers = #tpu.dot_dimension_numbers<[1], [0], [0], [1], [0, 0, 1, 1], [], []>} : vector<8x4xbf16>, vector<4x256xbf16>, vector<8x256xf32> -> vector<8x256xf32>
    %c0_4 = arith.constant 0 : index
    %c0_5 = arith.constant 0 : index
    %c0_6 = arith.constant 0 : index
    %4 = vector.load %arg4[%c0_4, %c0_5, %c0_6] : memref<1x8x256xf32, #tpu.memory_space<vmem>>, vector<1x8x256xf32>
    %5 = vector.shape_cast %4 : vector<1x8x256xf32> to vector<8x256xf32>
    %6 = vector.shape_cast %3 : vector<8x256xf32> to vector<1x8x256xf32>
    tpu.vector_store %arg4[%c0_4, %c0_5, %c0_6], %6 {strides = array<i32>} : memref<1x8x256xf32, #tpu.memory_space<vmem>>, vector<1x8x256xf32>,
    return
  }
  func.func @transform_0(%arg0: i32, %arg1: i32) -> (i32, i32) {
    %c0_i32 = arith.constant 0 : i32
    %c0_i32_0 = arith.constant 0 : i32
    %c0_i32_1 = arith.constant 0 : i32
    return %c0_i32, %c0_i32_0 : i32, i32
  }
  func.func @transform_1(%arg0: i32, %arg1: i32) -> (i32, i32, i32) {
    %c0_i32 = arith.constant 0 : i32
    %c0_i32_0 = arith.constant 0 : i32
    return %arg1, %c0_i32, %arg0 : i32, i32, i32
  }
  func.func @transform_2(%arg0: i32, %arg1: i32) -> (i32, i32, i32) {
    %c0_i32 = arith.constant 0 : i32
    %c0_i32_0 = arith.constant 0 : i32
    return %arg1, %c0_i32, %arg0 : i32, i32, i32
  }
}

</mosaic_0001>

<bundles_post_ra>
// kernel: tpu_custom_call.1
= control target key start
LH: loop header
LB: loop body
LE: loop exit
PB: predicated region body
PF: predicated region fallthrough
CT: control target
= control target key end

     0   :  { %7 = vsyncpa [#allocation3], 0  ;;  %s618_s0 = inlined_call_operand.vmem [shape: bf16[8,4], index: 0, kind: input, shape index: {}]   ;;  %s619_s1 = inlined_call_operand.vmem [shape: bf16[2,4,256], index: 1, kind: input, shape index: {}]   ;;  %s620_s2 = inlined_call_operand.hbm [shape: f32[2,8,256], index: 2, kind: output, shape index: {}]  }
   0x1   :  { %9 = vsyncpa [#allocation3 + $0x1], 0  ;;  %s503_s9 = smov 0   ;;  %s505_s10 = smov 0  }
   0x2   :  { %s507_s11 = smov 0   ;;  %s509_s12 = smov 0  }
   0x3   :  { %s511_s13 = smov 0   ;;  %s513_s14 = smov 0  }
   0x4 LB: > { %s332_s15 = sadd.s32 4294967295, %s484_s14   ;;  %s333_s16 = sadd.s32 4294967294, %s484_s14   ;;  %s484_s14 = sphi %s513_s14, %s15_s14   ;;  %s480_s13 = sphi %s511_s13, %s627_s13   ;;  %s476_s12 = sphi %s509_s12, %s626_s12   ;;  %s472_s11 = sphi %s507_s11, %s625_s11   ;;  %s468_s10 = sphi %s505_s10, %s624_s10   ;;  %s464_s9 = sphi %s503_s9, %s623_s9  }
   0x5   : > { %s24_s17 = sadd.s32 1, %s480_s13  ;;  %s85_s18 = sadd.s32 1, %s472_s11 }
   0x6   : > { %p25_p0 = scmp.ge.s32.totalorder %s24_s17, 2  ;;  %p95_p1 = scmp.ne.s32.totalorder %s472_s11, %s468_s10 }
   0x7   : > { %p96_p2 = scmp.eq.s32.totalorder %s332_s15, 1  ;;  %p101_p3 = scmp.ne.s32.totalorder %s468_s10, %s464_s9 }
   0x8   : > { %s629_s17 = smov (%p25_p0, %s24_s17), 0  ;;  %p102_p5 = scmp.eq.s32.totalorder %s333_s16, 1 }
   0x9   : > { %p543_p4 = por %p96_p2, %p95_p1  ;;  %s80_s20 = ssub.s32 %s480_s13, %s629_s17 }
   0xa   : > { %p336_p6 = scmp.ge.s32.totalorder %s484_s14, 1  ;;  %p83_p7 = scmp.eq.s32.totalorder %s80_s20, 0 }
   0xb   : > { %p550_p8 = por %p102_p5, %p101_p3  ;;  %p136_p9 = scmp.lt.s32.totalorder %s484_s14, 3 }
   0xc   : > { %s556_s22 = scalar_select %p83_p7, %s472_s11, %s85_s18  }
   0xd   : > { %p137_p10 = pnand %p336_p6, %p136_p9 }
   0xe   : > { %p163_p11 = scmp.lt.s32.totalorder (!%p137_p10), %s476_s12, 1  ;;  %v486_v0 = vmov (!%p137_p10), 0   ;;  %vm189_vm0 = vcmask (!%p137_p10), 1041408   ;;  %v174_v4 = vld [vmem:[%s618_s0] sm:$0xf] (!%p137_p10)  ;;  %vm185_vm1 = vcmask (!%p137_p10), 31744  }
   0xf   : > { %140 = sbr.rel (%p137_p10) target bundleno = 261 (0x105), region = 28  ;;  %228 = vmatprep.mubr.bf16.mxu0 (!%p137_p10), %v486_v0  ;;  %s159_s30 = sand.u32 (!%p137_p10), 1, %s468_s10  }
  0x10   : > { %s337_s3 = sshll.u32 (!%p137_p10), %s159_s30, 4  ;;  %s349_s6 = sshll.u32 (!%p137_p10), %s476_s12, 8 }
  0x11   : > { %s161_s4 = scalar_lea.vmem (!%p137_p10), [#allocation2], %s337_s3  ;;  %s573_s15 = scalar_lea.hbm (!%p137_p10), %s620_s2, %s349_s6 }
  0x12   : > { %s256_s5 = sshll.u32 (!%p137_p10), %s161_s4, 4  ;;  %s240_s16 = scalar_lea.sflag (!%p137_p10), [#allocation3], %s159_s30  ;;  %s568_s5 = int_to_ptr.vmem [resolvable:$true] %s256_s5 }
  0x13   : > { %s406_s18 = scalar_lea.vmem (!%p137_p10), %s568_s5, 256 }
  0x14   : > { %p407_p12 = scmp.ne.s32.totalorder (!%p137_p10), %s568_s5, %s406_s18 }
  0x16   : > { %s164_s23 = scalar_select %p163_p11, %s476_s12, 1 }
  0x17   : > { %p408_p13 = pnand %p407_p12, %p543_p4  ;;  %s487_s12 = smov [#allocation2]  }
  0x18   : > { %s348_s24 = sshll.u32 %s164_s23, 2  ;;  %s410_s20 = sshll.u32 %s487_s12, 4  ;;  %s411_s20 = int_to_ptr.vmem [resolvable:$false] %s410_s20 }
  0x19   : > { %s170_s27 = scalar_lea.vmem %s619_s1, %s348_s24  ;;  %p409_p0 = pneg %p408_p13 }
  0x1a   : > { %v340_v1 = vld.sshfl [vmem:[%s170_s27] sm:$0x33 pattern:$0x76325410]  ;;  %s412_s23 = scalar_lea.vmem %s411_s20, 512  ;;  %p413_p1 = scmp.lt.s32.totalorder %s568_s5, %s411_s20 }
  0x1b   : > { %v184_v2 = vcombine.high %v340_v1, %v340_v1  ;;  %v191_v3 = vsel %vm189_vm0, %v340_v1, 0  ;;  %p414_p2 = scmp.lt.s32.totalorder %s412_s23, %s406_s18 }
  0x1d   : > { %341 = vmatprep.subr.msk.bf16.mxu0 %vm189_vm0, %v184_v2  ;;  %p415_p3 = por %p414_p2, %p413_p1 }
  0x1e   : > { %197 = vmatpush1.bf16.msra.mxu0 %v191_v3 }
  0x1f   : > { %p416_p5 = pnand %p415_p3, %p409_p0 }
  0x21   : > { %342 = vmatmul.mubr.msk.bf16.vlgmr.msra.gmra.mrb[0].mxu0 %vm185_vm1, %v174_v4 }
  0xf4   : > { %v230_v5 = vpop.f32.mrb[0].mxu0 }
  0xf5   : > { %237 = vst [vmem:[%s161_s4] sm:$0xff] %v230_v5  ;;  %v232_v6 = vpop.f32.mrb[1].mxu0 }
  0xf6   : > { %238 = vst [vmem:[%s161_s4 + $0x8] sm:$0xff] %v232_v6  ;;  %v234_v7 = vpop.f32.mrb[2].mxu0 }
  0xf7   : > { %v235_v8 = vpop.f32.mrb[3].mxu0 }
  0xf8   : > { %419 = shalt.err (!%p416_p5)
}
  0xf9   : > { %s420_s24 = scalar_lea.hbm %s573_s15, 256  ;;  %s424_s27 = scalar_lea.hbm %s620_s2, 512 }
  0xfa   : > { %p421_p6 = scmp.ne.s32.totalorder %s573_s15, %s420_s24  ;;  %p425_p10 = scmp.lt.u32.totalorder %s573_s15, %s620_s2 }
  0xfb   : > { %p426_p11 = scmp.lt.u32.totalorder %s424_s27, %s420_s24  ;;  %p428_p13 = scmp.lt.u32.totalorder %s420_s24, %s573_s15 }
  0xfc   : > { %p422_p7 = pnand %p421_p6, %p543_p4 }
  0xfd   : > { %p427_p12 = por %p426_p11, %p425_p10 }
  0xfe   : > { %p423_p9 = pneg %p422_p7 }
  0xff   : > { %p429_p0 = por %p428_p13, %p427_p12 }
 0x101   : > { %p430_p1 = pnand %p429_p0, %p423_p9 }
 0x103   : > { %433 = shalt.err (!%p430_p1)
}
 0x104   : > { %350 = dma.vmem_to_hbm [thread:$0]  (%p543_p4), %s568_s5, 256, %s573_s15, %s240_s16  }
 0x105 PF: > { %p356_p2 = scmp.ge.s32.totalorder %s484_s14, 2  ;;  %s268_s30 = sand.u32 1, %s464_s9  }
 0x106   : > { %s269_s3 = scalar_lea.sflag [#allocation3], %s268_s30 }
 0x107   : > { %p353_p3 = pnand %p356_p2, %p550_p8 }
 0x109   : > { %459 = dma.done.wait (!%p353_p3), %s269_s3, 256  }
 0x10a   : > { %461 = vsyncadd (!%p353_p3), %s269_s3, 4294967040  ;;  %s15_s14 = sadd.s32 1, %s484_s14   ;;  %s623_s9 = smov %s468_s10 }
 0x10b   : > { %p12_p5 = scmp.ge.s32.totalorder %s15_s14, 4   ;;  %s624_s10 = smov %s472_s11 }
 0x10c   : > { %s625_s11 = smov %s556_s22  ;;  %s626_s12 = smov %s480_s13 }
 0x10d   : > { %s627_s13 = smov %s629_s17  ;;  %14 = sbr.rel (!%p12_p5) target bundleno = 4 (0x4), region = 63 }
 0x114   :  { %274 = vsyncpa [#allocation3], 1 }
 0x115   :  { %276 = vsyncpa [#allocation3 + $0x1], 1 }

</bundles_post_ra>
